<compile_context>
chip_gen: v7x
topology: tpu7x:2x2x1
jax: 0.10.0
libtpu: 0.0.40
codegen_flags: <defaults>
</compile_context>

<pallas_src>
import math

import jax
import jax.numpy as jnp
from jax import lax
from jax.experimental import pallas as pl
from jax.experimental.pallas import tpu as pltpu

# Module hyper-parameters (from the PyTorch script)
DIM = 1
NUM_HEADS = 1
DROPOUT_P = 1  # no-op at inference

_INV_SQRT_DIM = 1.0 / math.sqrt(DIM)   # == 1.0
_SCALE = 1.0 / NUM_HEADS               # == 1.0


def _attn_kernel(q_ref, k_ref, o_ref):
    # Single invocation, no grid: whole arrays are resident in VMEM.
    q = q_ref[...]  # (B, Sq, D) f32
    k = k_ref[...]  # (B, Sk, D) f32

    # v2[b] = key[b] @ query[b]^T  -- contract feature dims directly (no .T).
    v2 = lax.dot_general(
        k, q,
        dimension_numbers=(((2,), (2,)), ((0,), (0,))),
        preferred_element_type=jnp.float32,
    )  # (B, Sk, Sq)

    # v3 = v2 / sqrt(dim); DIM == 1 -> skip the multiply at trace time.
    v3 = v2 if _INV_SQRT_DIM == 1.0 else v2 * _INV_SQRT_DIM

    # scores[b] = (v3[b] @ v3[b]^T) * (1 / num_heads)  -- contract last dims.
    scores = lax.dot_general(
        v3, v3,
        dimension_numbers=(((2,), (2,)), ((0,), (0,))),
        preferred_element_type=jnp.float32,
    )  # (B, Sk, Sk)
    if _SCALE != 1.0:
        scores = scores * _SCALE

    # Softmax over the last axis (approx reciprocal goes to the EUP slot).
    m = jnp.max(scores, axis=-1, keepdims=True)
    e = jnp.exp(scores - m)
    attn = e * pl.reciprocal(jnp.sum(e, axis=-1, keepdims=True), approx=True)

    # out[b] = attn[b] @ v2[b]
    out = lax.dot_general(
        attn, v2,
        dimension_numbers=(((2,), (1,)), ((0,), (0,))),
        preferred_element_type=jnp.float32,
    )  # (B, Sk, Sq)

    o_ref[...] = out.astype(o_ref.dtype)


@jax.jit
def model_forward(query, key, value=None):
    """Pallas implementation of Model.forward(query, key, value).

    query: (B, Sq, D), key: (B, Sk, D). `value` is accepted for API parity but
    unused (the reference forward never uses it). Returns (B, Sk, Sq) f32.
    """
    B, Sq, D = query.shape
    Bk, Sk, Dk = key.shape
    assert B == Bk and D == Dk, "query/key batch and feature dims must match"

    return pl.pallas_call(
        _attn_kernel,
        out_shape=jax.ShapeDtypeStruct((B, Sk, Sq), jnp.float32),
        in_specs=[
            pl.BlockSpec(memory_space=pltpu.MemorySpace.VMEM),
            pl.BlockSpec(memory_space=pltpu.MemorySpace.VMEM),
        ],
        out_specs=pl.BlockSpec(memory_space=pltpu.MemorySpace.VMEM),
    )(query, key)


def _reference(query, key):
    # Pure-JAX reference for a correctness check.
    v2 = jnp.einsum("bkd,bqd->bkq", query=None, *(key, query)) if False else \
         jnp.einsum("bkd,bqd->bkq", key, query)
    v3 = v2 / math.sqrt(DIM)
    scores = jnp.einsum("bkq,bjq->bkj", v3, v3) * _SCALE
    attn = jax.nn.softmax(scores, axis=-1)
    return jnp.einsum("bkj,bjq->bkq", attn, v2)


if __name__ == "__main__":
    rng = jax.random.PRNGKey(0)
    k1, k2, k3 = jax.random.split(rng, 3)

    # Shapes from the PyTorch script: query (4, 4, 128), key (4, 6, 128)
    query = jax.random.normal(k1, (4, 4, 128), dtype=jnp.float32)
    key = jax.random.normal(k2, (4, 6, 128), dtype=jnp.float32)
    value = jax.random.normal(k3, (4, 6, 128), dtype=jnp.float32)  # unused

    out = jax.block_until_ready(model_forward(query, key, value))

    ref = _reference(query, key)
    assert out.shape == (4, 6, 4), out.shape
    # Tolerance accounts for the approximate (EUP) reciprocal in the softmax.
    max_err = float(jnp.max(jnp.abs(out - ref)))
    assert jnp.allclose(out, ref, atol=1e-2, rtol=1e-2), f"mismatch: {max_err}"

    print("KERNEL_OK")
</pallas_src>

<mosaic_0001>
module attributes {stable_mosaic.version = 11 : i64} {
  func.func @_attn_kernel(%arg0: memref<4x4x128xf32, #tpu.memory_space<vmem>>, %arg1: memref<4x6x128xf32, #tpu.memory_space<vmem>>, %arg2: memref<4x6x4xf32, #tpu.memory_space<vmem>>) attributes {dimension_semantics = [], scalar_prefetch = 0 : i64, scratch_operands = 0 : i64, tpu.core_type = #tpu.core_type<tc>} {
    %c0 = arith.constant 0 : index
    %c0_0 = arith.constant 0 : index
    %c0_1 = arith.constant 0 : index
    %0 = vector.load %arg0[%c0, %c0_0, %c0_1] : memref<4x4x128xf32, #tpu.memory_space<vmem>>, vector<4x4x128xf32>
    %c0_2 = arith.constant 0 : index
    %c0_3 = arith.constant 0 : index
    %c0_4 = arith.constant 0 : index
    %1 = vector.load %arg1[%c0_2, %c0_3, %c0_4] : memref<4x6x128xf32, #tpu.memory_space<vmem>>, vector<4x6x128xf32>
    %cst = arith.constant dense<0.000000e+00> : vector<4x6x4xf32>
    %2 = tpu.matmul %1, %0, %cst {dimension_numbers = #tpu.dot_dimension_numbers<[2], [2], [1], [1], [0, 0, 0, 1, 1, 1], [0], [0]>} : vector<4x6x128xf32>, vector<4x4x128xf32>, vector<4x6x4xf32> -> vector<4x6x4xf32>
    %cst_5 = arith.constant dense<0.000000e+00> : vector<4x6x6xf32>
    %3 = tpu.matmul %2, %2, %cst_5 {dimension_numbers = #tpu.dot_dimension_numbers<[2], [2], [1], [1], [0, 0, 0, 1, 1, 1], [0], [0]>} : vector<4x6x4xf32>, vector<4x6x4xf32>, vector<4x6x6xf32> -> vector<4x6x6xf32>
    %cst_6 = arith.constant dense<0xFF800000> : vector<4x6xf32>
    %4 = vector.multi_reduction <maximumf>, %3, %cst_6 [2] : vector<4x6x6xf32> to vector<4x6xf32>
    %5 = vector.shape_cast %4 : vector<4x6xf32> to vector<4x6x1xf32>
    %6 = vector.broadcast %5 : vector<4x6x1xf32> to vector<4x6x6xf32>
    %7 = arith.subf %3, %6 : vector<4x6x6xf32>
    %8 = math.exp %7 : vector<4x6x6xf32>
    %cst_7 = arith.constant dense<0.000000e+00> : vector<4x6xf32>
    %9 = vector.multi_reduction <add>, %8, %cst_7 [2] : vector<4x6x6xf32> to vector<4x6xf32>
    %10 = vector.shape_cast %9 : vector<4x6xf32> to vector<4x6x1xf32>
    %11 = tpu.reciprocal %10 {approx = true} : vector<4x6x1xf32> -> vector<4x6x1xf32>
    %12 = vector.broadcast %11 : vector<4x6x1xf32> to vector<4x6x6xf32>
    %13 = arith.mulf %8, %12 : vector<4x6x6xf32>
    %cst_8 = arith.constant dense<0.000000e+00> : vector<4x6x4xf32>
    %14 = tpu.matmul %13, %2, %cst_8 {dimension_numbers = #tpu.dot_dimension_numbers<[2], [1], [1], [2], [0, 0, 0, 1, 1, 2], [0], [0]>} : vector<4x6x6xf32>, vector<4x6x4xf32>, vector<4x6x4xf32> -> vector<4x6x4xf32>
    %c0_9 = arith.constant 0 : index
    %c0_10 = arith.constant 0 : index
    %c0_11 = arith.constant 0 : index
    %15 = vector.load %arg2[%c0_9, %c0_10, %c0_11] : memref<4x6x4xf32, #tpu.memory_space<vmem>>, vector<4x6x4xf32>
    tpu.vector_store %arg2[%c0_9, %c0_10, %c0_11], %14 {strides = array<i32>} : memref<4x6x4xf32, #tpu.memory_space<vmem>>, vector<4x6x4xf32>,
    return
  }
}

</mosaic_0001>

<bundles_post_ra>
// kernel: model_forward.1
= control target key start
LH: loop header
LB: loop body
LE: loop exit
PB: predicated region body
PF: predicated region fallthrough
CT: control target
= control target key end

     0   :  { %v1066_v0 = vmov 0.0   ;;  %vm1067_vm0 = vmmov 0   ;;  %vm299_vm1 = vcmask 31744   ;;  %vm641_vm2 = vcmask 1045504   ;;  %s1185_s0 = inlined_call_operand.vmem [shape: f32[4,4,128], index: 0, kind: input, shape index: {}]   ;;  %s1186_s1 = inlined_call_operand.vmem [shape: f32[4,6,128], index: 1, kind: input, shape index: {}]   ;;  %s1187_s2 = inlined_call_operand.vmem [shape: f32[4,6,4], index: 2, kind: output, shape index: {}]  }
   0x1   :  { %988 = vmatprep.subr.mxu0 %v1066_v0  ;;  %993 = vmatprep.subr.mxu1 %v1066_v0  ;;  %v11_v1 = vld [vmem:[%s1185_s0] sm:$0xf]  ;;  %v12_v2 = vld [vmem:[%s1185_s0 + $0x4] sm:$0xf]  ;;  %v16_v4 = vld [vmem:[%s1186_s1 + $0x8] sm:$0x3f] }
   0x2   :  { %989 = vmatpush3.xpose.msra.mxu0 %v11_v1  ;;  %994 = vmatpush3.xpose.msra.mxu1 %v12_v2  ;;  %v15_v3 = vld [vmem:[%s1186_s1] sm:$0x3f]  ;;  %v13_v5 = vld [vmem:[%s1185_s0 + $0x8] sm:$0xf]  ;;  %v14_v6 = vld [vmem:[%s1185_s0 + $0xc] sm:$0xf] }
   0x3   :  { %990 = vmatprep.mubr.msk.f32.mxu0 %vm1067_vm0, %v1066_v0  ;;  %995 = vmatprep.mubr.msk.f32.mxu1 %vm1067_vm0, %v1066_v0  ;;  %v17_v7 = vld [vmem:[%s1186_s1 + $0x10] sm:$0x3f]  ;;  %v18_v8 = vld [vmem:[%s1186_s1 + $0x18] sm:$0x3f]  ;;  %vm592_vm3 = vcmask 46080   ;;  %vm637_vm4 = vcmask 48128  }
   0x4   :  { %998 = vmatprep.subr.mxu0 %v1066_v0  ;;  %1003 = vmatprep.subr.mxu1 %v1066_v0  ;;  %vm939_vm5 = vcmask 29696  }
   0x5   :  { %991 = vmatmul.mubr.f32.vlgmr.msra.gmra.mrb[0].mxu0 %v15_v3  ;;  %996 = vmatmul.mubr.f32.vlgmr.msra.gmra.mrb[0].mxu1 %v16_v4 }
   0x6   :  { %999 = vmatpush3.xpose.msra.mxu0 %v13_v5  ;;  %1004 = vmatpush3.xpose.msra.mxu1 %v14_v6 }
   0x7   :  { %1000 = vmatprep.mubr.msk.f32.mxu0 %vm1067_vm0, %v1066_v0  ;;  %1005 = vmatprep.mubr.msk.f32.mxu1 %vm1067_vm0, %v1066_v0 }
   0x8   :  { %1008 = vmatprep.subr.mxu0 %v1066_v0  ;;  %1013 = vmatprep.subr.mxu1 %v1066_v0 }
   0x9   :  { %1001 = vmatmul.mubr.f32.vlgmr.msra.gmra.mrb[2].mxu0 %v17_v7  ;;  %1006 = vmatmul.mubr.f32.vlgmr.msra.gmra.mrb[2].mxu1 %v18_v8 }
   0xa   :  { %1010 = vmatprep.mubr.msk.f32.mxu0 %vm1067_vm0, %v1066_v0  ;;  %1015 = vmatprep.mubr.msk.f32.mxu1 %vm1067_vm0, %v1066_v0 }
  0xd8   :  { %v85_v9 = vpop.f32.mrb[0].mxu0  ;;  %v155_v10 = vpop.f32.mrb[0].mxu1 }
  0xd9   :  { %v992_v11 = vpop.f32.mrb[1].mxu0  ;;  %1009 = vmatpush3.xpose.msk.msra.mxu0 %vm299_vm1, %v85_v9  ;;  %1014 = vmatpush3.xpose.msk.msra.mxu1 %vm299_vm1, %v155_v10  ;;  %v997_v12 = vpop.f32.mrb[1].mxu1 }
  0xda   :  { %1018 = vmatprep.subr.mxu0 %v1066_v0  ;;  %1023 = vmatprep.subr.mxu1 %v1066_v0 }
  0xdc   :  { %v1129_v13 = vpop.f32.mrb[2].mxu0  ;;  %v1131_v14 = vpop.f32.mrb[2].mxu1  ;;  %1011 = vmatmul.mubr.msk.f32.vlgmr.msra.gmra.mrb[4].mxu0 %vm299_vm1, %v85_v9  ;;  %1016 = vmatmul.mubr.msk.f32.vlgmr.msra.gmra.mrb[4].mxu1 %vm299_vm1, %v155_v10 }
  0xdd   :  { %v1002_v15 = vpop.f32.mrb[3].mxu0  ;;  %1019 = vmatpush3.xpose.msk.msra.mxu0 %vm299_vm1, %v1129_v13  ;;  %1024 = vmatpush3.xpose.msk.msra.mxu1 %vm299_vm1, %v1131_v14  ;;  %v1007_v16 = vpop.f32.mrb[3].mxu1 }
  0xde   :  { %1020 = vmatprep.mubr.msk.f32.mxu0 %vm1067_vm0, %v1066_v0  ;;  %1025 = vmatprep.mubr.msk.f32.mxu1 %vm1067_vm0, %v1066_v0 }
  0xdf   :  { %1028 = vmatprep.subr.mxu0 %v1066_v0  ;;  %1033 = vmatprep.subr.mxu1 %v1066_v0 }
  0xe0   :  { %1021 = vmatmul.mubr.msk.f32.vlgmr.msra.gmra.mrb[6].mxu0 %vm299_vm1, %v1129_v13  ;;  %1026 = vmatmul.mubr.msk.f32.vlgmr.msra.gmra.mrb[6].mxu1 %vm299_vm1, %v1131_v14 }
  0xe1   :  { %1029 = vmatpush3.msk.msra.mxu0 %vm641_vm2, %v85_v9  ;;  %1034 = vmatpush3.msk.msra.mxu1 %vm641_vm2, %v155_v10 }
  0xe2   :  { %1030 = vmatprep.mubr.msk.f32.mxu0 %vm1067_vm0, %v1066_v0  ;;  %1038 = vmatprep.subr.mxu0 %v1066_v0 }
  0xe3   :  { %1035 = vmatprep.mubr.msk.f32.mxu1 %vm1067_vm0, %v1066_v0  ;;  %1043 = vmatprep.subr.mxu1 %v1066_v0 }
 0x1af   :  { %v369_v17 = vpop.f32.mrb[4].mxu0  ;;  %v442_v18 = vpop.f32.mrb[4].mxu1 }
 0x1b0   :  { %v1012_v19 = vpop.f32.mrb[5].mxu0  ;;  %v1017_v20 = vpop.f32.mrb[5].mxu1  ;;  %v593_v21 = vsel %vm592_vm3, %v369_v17, -inf  ;;  %v596_v26 = vsel %vm592_vm3, %v442_v18, -inf }
 0x1b1   :  { %594 = vmax.xlane.f32.xlu0 %v593_v21 }
 0x1b3   :  { %v515_v22 = vpop.f32.mrb[6].mxu0  ;;  %v588_v23 = vpop.f32.mrb[6].mxu1 }
 0x1b4   :  { %v1022_v24 = vpop.f32.mrb[7].mxu0  ;;  %v1027_v25 = vpop.f32.mrb[7].mxu1  ;;  %v599_v27 = vsel %vm592_vm3, %v515_v22, -inf  ;;  %v602_v28 = vsel %vm592_vm3, %v588_v23, -inf }
 0x1b5   :  { %597 = vmax.xlane.f32.xlu0 %v596_v26  ;;  %600 = vmax.xlane.f32.xlu1 %v599_v27 }
 0x1b9   :  { %603 = vmax.xlane.f32.xlu1 %v602_v28 }
 0x23e   :  { %v595_v29 = vpop.xlane.xlu0 %594 }
 0x23f   :  { %v605_v30 = vsub.f32 %v369_v17, %v595_v29 }
 0x241   :  { %v609_v31 = vmul.f32 1.442695, %v605_v30 }
 0x242   :  { %v598_v32 = vpop.xlane.xlu0 %597  ;;  %v601_v33 = vpop.xlane.xlu1 %600 }
 0x243   :  { %1050 = vpow2.f32 %v609_v31  ;;  %v606_v34 = vsub.f32 %v442_v18, %v598_v32  ;;  %v607_v35 = vsub.f32 %v515_v22, %v601_v33 }
 0x245   :  { %v611_v36 = vmul.f32 1.442695, %v606_v34  ;;  %v613_v37 = vmul.f32 1.442695, %v607_v35 }
 0x246   :  { %v604_v38 = vpop.xlane.xlu1 %603 }
 0x247   :  { %1052 = vpow2.f32 %v611_v36  ;;  %v608_v39 = vsub.f32 %v588_v23, %v604_v38 }
 0x248   :  { %1054 = vpow2.f32 %v613_v37 }
 0x249   :  { %v615_v40 = vmul.f32 1.442695, %v608_v39 }
 0x24b   :  { %1056 = vpow2.f32 %v615_v40 }
 0x24d   :  { %v1051_v41 = vpop.eup %1050 }
 0x24e   :  { %v617_v42 = vsel %vm592_vm3, %v1051_v41, 0.0 }
 0x24f   :  { %618 = vadd.xlane.f32.xlu0 %v617_v42 }
 0x251   :  { %v1053_v43 = vpop.eup %1052 }
 0x252   :  { %v1055_v44 = vpop.eup %1054  ;;  %v620_v45 = vsel %vm592_vm3, %v1053_v43, 0.0 }
 0x253   :  { %621 = vadd.xlane.f32.xlu1 %v620_v45  ;;  %v623_v46 = vsel %vm592_vm3, %v1055_v44, 0.0 }
 0x254   :  { %624 = vadd.xlane.f32.xlu0 %v623_v46 }
 0x255   :  { %v1057_v47 = vpop.eup %1056 }
 0x256   :  { %v626_v48 = vsel %vm592_vm3, %v1057_v47, 0.0 }
 0x257   :  { %627 = vadd.xlane.f32.xlu1 %v626_v48 }
 0x2dc   :  { %v619_v49 = vpop.xlane.xlu0 %618 }
 0x2dd   :  { %1058 = vrcp.f32 %v619_v49 }
 0x2e0   :  { %v622_v50 = vpop.xlane.xlu1 %621 }
 0x2e1   :  { %v625_v51 = vpop.xlane.xlu0 %624  ;;  %1060 = vrcp.f32 %v622_v50 }
 0x2e2   :  { %1062 = vrcp.f32 %v625_v51 }
 0x2e4   :  { %v628_v52 = vpop.xlane.xlu1 %627 }
 0x2e5   :  { %1064 = vrcp.f32 %v628_v52 }
 0x2e7   :  { %v1059_v53 = vpop.eup %1058 }
 0x2e8   :  { %v633_v54 = vmul.f32 %v1059_v53, %v1051_v41 }
 0x2ea   :  { %1031 = vmatmul.mubr.msk.f32.vlgmr.msra.gmra.mrb[8].mxu0 %vm637_vm4, %v633_v54 }
 0x2eb   :  { %v1061_v55 = vpop.eup %1060  ;;  %1039 = vmatpush3.msk.msra.mxu0 %vm641_vm2, %v1129_v13  ;;  %1040 = vmatprep.mubr.msk.f32.mxu0 %vm1067_vm0, %v1066_v0 }
 0x2ec   :  { %v1063_v56 = vpop.eup %1062  ;;  %v634_v57 = vmul.f32 %v1061_v55, %v1053_v43 }
 0x2ed   :  { %v635_v58 = vmul.f32 %v1063_v56, %v1055_v44 }
 0x2ee   :  { %1036 = vmatmul.mubr.msk.f32.vlgmr.msra.gmra.mrb[8].mxu1 %vm637_vm4, %v634_v57 }
 0x2ef   :  { %v1065_v59 = vpop.eup %1064  ;;  %1041 = vmatmul.mubr.msk.f32.vlgmr.msra.gmra.mrb[10].mxu0 %vm637_vm4, %v635_v58  ;;  %1044 = vmatpush3.msk.msra.mxu1 %vm641_vm2, %v1131_v14 }
 0x2f0   :  { %v636_v60 = vmul.f32 %v1065_v59, %v1057_v47  ;;  %1045 = vmatprep.mubr.msk.f32.mxu1 %vm1067_vm0, %v1066_v0 }
 0x2f2   :  { %1046 = vmatmul.mubr.msk.f32.vlgmr.msra.gmra.mrb[10].mxu1 %vm637_vm4, %v636_v60 }
 0x3bd   :  { %v710_v61 = vpop.f32.mrb[8].mxu0 }
 0x3be   :  { %940 = vst.msk [vmem:[%s1187_s2] sm:$0x3f] %vm939_vm5, %v710_v61  ;;  %v1032_v62 = vpop.f32.mrb[9].mxu0 }
 0x3c1   :  { %v785_v63 = vpop.f32.mrb[8].mxu1 }
 0x3c2   :  { %941 = vst.msk [vmem:[%s1187_s2 + $0x8] sm:$0x3f] %vm939_vm5, %v785_v63  ;;  %v860_v1 = vpop.f32.mrb[10].mxu0  ;;  %v1037_v2 = vpop.f32.mrb[9].mxu1 }
 0x3c3   :  { %942 = vst.msk [vmem:[%s1187_s2 + $0x10] sm:$0x3f] %vm939_vm5, %v860_v1  ;;  %v1042_v0 = vpop.f32.mrb[11].mxu0 }
 0x3c5   :  { %v935_v3 = vpop.f32.mrb[10].mxu1 }
 0x3c6   :  { %943 = vst.msk [vmem:[%s1187_s2 + $0x18] sm:$0x3f] %vm939_vm5, %v935_v3  ;;  %v1047_v4 = vpop.f32.mrb[11].mxu1 }

</bundles_post_ra>
